<compile_context>
chip_gen: v6e
topology: v6e:2x2x1
jax: 0.10.0
libtpu: 0.0.40
codegen_flags: <defaults>
</compile_context>

<pallas_src>
import functools

import jax
import jax.numpy as jnp
from jax.experimental import pallas as pl
from jax.experimental.pallas import tpu as pltpu


def _round_up(x, n):
    return pl.cdiv(x, n) * n


def _cosface_kernel(emb_ref, w_ref, label_ref, out_ref, *, m, s, eps, tc):
    # emb_ref:   (N, E)  resident embeddings block (full array)
    # w_ref:     (E, tc) raw class-column tile of the kernel parameter
    # label_ref: (N, 1)  int32 class label per row (resident)
    # out_ref:   (N, tc) scaled-logits tile
    j = pl.program_id(0)

    w = w_ref[...]
    # Per-class-column inverse L2 norm of the *raw* weight tile; normalize the
    # (N, tc) matmul result instead of the (E, tc) weights.
    wf = w.astype(jnp.float32)
    col_sq = jnp.sum(wf * wf, axis=0, keepdims=True)           # (1, tc)
    inv_norm = jax.lax.rsqrt(jnp.maximum(col_sq, 1e-12))       # guard 0-norm cols

    emb = emb_ref[...]
    if emb.dtype != w.dtype:
        # Reduced-precision weight streaming (e.g. bf16): run the MXU in the
        # weight dtype; accumulation stays f32 via preferred_element_type.
        emb = emb.astype(w.dtype)

    cosine = jnp.dot(emb, w, preferred_element_type=jnp.float32) * inv_norm
    cosine = jnp.clip(cosine, -1.0 + eps, 1.0 - eps)

    # One-hot additive margin: bool mask + select, no float one-hot temporaries.
    n_rows = cosine.shape[0]
    col_ids = jax.lax.broadcasted_iota(jnp.int32, (n_rows, tc), 1) + j * tc
    is_target = col_ids == label_ref[...]                      # (N, tc) bool
    out_ref[...] = (jnp.where(is_target, cosine - m, cosine) * s).astype(
        out_ref.dtype)


def cosface_forward(embeddings, norms, label, kernel_param,
                    *, m=0.4, s=64.0, eps=1e-4, tc=512,
                    out_dtype=jnp.float32):
    """Pallas CosFace forward.  Returns scaled_cosine_m of shape (N, C)."""
    del norms  # accepted for parity with CosFace.forward, which ignores it
    N, E = embeddings.shape
    E2, C = kernel_param.shape
    assert E == E2
    assert tc % 128 == 0
    # Don't over-tile tiny heads; tile stays a multiple of 128 lanes.
    tc = min(tc, _round_up(C, 128))
    grid = (pl.cdiv(C, tc),)   # partial last tile -> masked boundary block

    label2d = label.reshape(N, 1).astype(jnp.int32)

    # Explicit VMEM budget: resident embeddings + double-buffered weight and
    # output tiles, 2x headroom, clamped to [32 MiB, 64 MiB] (v7x VMEM = 64 MiB).
    budget = (N * E * jnp.dtype(embeddings.dtype).itemsize
              + 2 * E * tc * jnp.dtype(kernel_param.dtype).itemsize
              + 2 * N * tc * jnp.dtype(out_dtype).itemsize
              + 2 * N * 4)
    vmem_limit = int(min(max(2 * budget, 32 * 1024 * 1024), 64 * 1024 * 1024))

    kernel_fn = functools.partial(_cosface_kernel, m=m, s=s, eps=eps, tc=tc)
    return pl.pallas_call(
        kernel_fn,
        out_shape=jax.ShapeDtypeStruct((N, C), out_dtype),
        grid=grid,
        in_specs=[
            pl.BlockSpec((N, E), lambda j: (0, 0)),    # embeddings: resident
            pl.BlockSpec((E, tc), lambda j: (0, j)),   # raw weight: class tile
            pl.BlockSpec((N, 1), lambda j: (0, 0)),    # labels: resident
        ],
        out_specs=pl.BlockSpec((N, tc), lambda j: (0, j)),
        compiler_params=pltpu.CompilerParams(
            dimension_semantics=("parallel",),
            vmem_limit_bytes=vmem_limit),
    )(embeddings, kernel_param, label2d)


def _reference_forward(embeddings, label, kernel_param, *, m=0.4, s=64.0,
                       eps=1e-4):
    """Plain-JAX reference matching the PyTorch module (high-precision matmul)."""
    kernel_norm = kernel_param / jnp.linalg.norm(kernel_param, axis=0,
                                                 keepdims=True)
    cosine = jnp.dot(embeddings, kernel_norm,
                     precision=jax.lax.Precision.HIGHEST)
    cosine = jnp.clip(cosine, -1.0 + eps, 1.0 - eps)
    onehot = jax.nn.one_hot(label, cosine.shape[1], dtype=cosine.dtype)
    return (cosine - onehot * m) * s


if __name__ == "__main__":
    # Small shapes consistent with the module: (N, E) embeddings, (N, 1) norms
    # (unused by CosFace), (N,) labels, (E, C) class-kernel parameter.
    N, E, C = 8, 64, 384

    key = jax.random.PRNGKey(0)
    k_emb, k_norm, k_lab, k_w = jax.random.split(key, 4)

    embeddings = jax.random.normal(k_emb, (N, E), dtype=jnp.float32)
    embeddings = embeddings / jnp.linalg.norm(embeddings, axis=1, keepdims=True)
    norms = jax.random.uniform(k_norm, (N, 1), minval=5.0, maxval=40.0,
                               dtype=jnp.float32)
    label = jax.random.randint(k_lab, (N,), 0, C, dtype=jnp.int32)

    # Parameter init mimicking uniform(-1,1).renorm_(2,1,1e-5).mul_(1e5)
    # (i.e. unit-norm class columns); forward re-normalizes columns anyway.
    kernel_param = jax.random.uniform(k_w, (E, C), minval=-1.0, maxval=1.0,
                                      dtype=jnp.float32)
    kernel_param = kernel_param / jnp.maximum(
        jnp.linalg.norm(kernel_param, axis=0, keepdims=True), 1e-5)

    ref = _reference_forward(embeddings, label, kernel_param)

    # 1) f32 weights, non-divisible class count (C=384, tc=256 -> grid=(2,),
    #    masked partial last tile).  Tolerance accounts for the kernel's MXU
    #    default-precision f32 matmul vs the HIGHEST-precision reference
    #    (logits are scaled by s=64).
    out_f32 = jax.block_until_ready(
        cosface_forward(embeddings, norms, label, kernel_param, tc=256))
    assert out_f32.shape == (N, C)
    err_f32 = float(jnp.max(jnp.abs(out_f32 - ref)))
    assert jnp.allclose(out_f32, ref, rtol=5e-3, atol=0.3), err_f32

    # 2) bf16 weight streaming (half the HBM bytes, 2x MXU rate), f32 accumulate.
    out_bf16 = jax.block_until_ready(
        cosface_forward(embeddings, norms, label,
                        kernel_param.astype(jnp.bfloat16), tc=128))
    err_bf16 = float(jnp.max(jnp.abs(out_bf16 - ref)))
    assert jnp.allclose(out_bf16, ref, rtol=2e-2, atol=1.0), err_bf16

    print("KERNEL_OK")
</pallas_src>

<mosaic_0001>
module attributes {stable_mosaic.version = 11 : i64} {
  func.func @_cosface_kernel(%arg0: i32, %arg1: memref<8x64xf32, #tpu.memory_space<vmem>>, %arg2: memref<64x256xf32, #tpu.memory_space<vmem>>, %arg3: memref<8x1xi32, #tpu.memory_space<vmem>>, %arg4: memref<8x256xf32, #tpu.memory_space<vmem>>) attributes {dimension_semantics = [#tpu.dimension_semantics<parallel>], iteration_bounds = array<i64: 2>, scalar_prefetch = 0 : i64, scratch_operands = 0 : i64, tpu.core_type = #tpu.core_type<tc>, window_params = [{pipeline_mode = #tpu.pipeline_mode<synchronous>, transform_indices = @transform_0, window_bounds = array<i64: 8, 64>}, {transform_indices = @transform_1, window_bounds = array<i64: 64, 256>}, {pipeline_mode = #tpu.pipeline_mode<synchronous>, transform_indices = @transform_2, window_bounds = array<i64: 8, 1>}, {transform_indices = @transform_3, window_bounds = array<i64: 8, 256>}]} {
    %c0 = arith.constant 0 : index
    %c0_0 = arith.constant 0 : index
    %0 = vector.load %arg2[%c0, %c0_0] : memref<64x256xf32, #tpu.memory_space<vmem>>, vector<64x256xf32>
    %1 = arith.mulf %0, %0 : vector<64x256xf32>
    %cst = arith.constant dense<0.000000e+00> : vector<256xf32>
    %2 = vector.multi_reduction <add>, %1, %cst [0] : vector<64x256xf32> to vector<256xf32>
    %3 = vector.shape_cast %2 : vector<256xf32> to vector<1x256xf32>
    %cst_1 = arith.constant 9.99999996E-13 : f32
    %4 = vector.broadcast %cst_1 : f32 to vector<1x256xf32>
    %5 = arith.maximumf %3, %4 : vector<1x256xf32>
    %6 = math.rsqrt %5 : vector<1x256xf32>
    %c0_2 = arith.constant 0 : index
    %c0_3 = arith.constant 0 : index
    %7 = vector.load %arg1[%c0_2, %c0_3] : memref<8x64xf32, #tpu.memory_space<vmem>>, vector<8x64xf32>
    %cst_4 = arith.constant dense<0.000000e+00> : vector<8x256xf32>
    %8 = tpu.matmul %7, %0, %cst_4 {dimension_numbers = #tpu.dot_dimension_numbers<[1], [0], [0], [1], [0, 0, 1, 1], [], []>} : vector<8x64xf32>, vector<64x256xf32>, vector<8x256xf32> -> vector<8x256xf32>
    %9 = vector.broadcast %6 : vector<1x256xf32> to vector<8x256xf32>
    %10 = arith.mulf %8, %9 : vector<8x256xf32>
    %cst_5 = arith.constant -0.999899983 : f32
    %cst_6 = arith.constant 0.999899983 : f32
    %11 = vector.broadcast %cst_5 : f32 to vector<8x256xf32>
    %12 = arith.maximumf %11, %10 : vector<8x256xf32>
    %13 = vector.broadcast %cst_6 : f32 to vector<8x256xf32>
    %14 = arith.minimumf %13, %12 : vector<8x256xf32>
    %15 = tpu.iota {dimensions = array<i32: 1>} : vector<8x256xi32>
    %c256_i32 = arith.constant 256 : i32
    %16 = arith.muli %arg0, %c256_i32 : i32
    %17 = vector.broadcast %16 : i32 to vector<8x256xi32>
    %18 = arith.addi %15, %17 : vector<8x256xi32>
    %c0_7 = arith.constant 0 : index
    %c0_8 = arith.constant 0 : index
    %19 = vector.load %arg3[%c0_7, %c0_8] : memref<8x1xi32, #tpu.memory_space<vmem>>, vector<8x1xi32>
    %20 = vector.broadcast %19 : vector<8x1xi32> to vector<8x256xi32>
    %21 = arith.cmpi eq, %18, %20 : vector<8x256xi32>
    %cst_9 = arith.constant 4.000000e-01 : f32
    %22 = vector.broadcast %cst_9 : f32 to vector<8x256xf32>
    %23 = arith.subf %14, %22 : vector<8x256xf32>
    %24 = arith.select %21, %23, %14 : vector<8x256xi1>, vector<8x256xf32>
    %cst_10 = arith.constant 6.400000e+01 : f32
    %25 = vector.broadcast %cst_10 : f32 to vector<8x256xf32>
    %26 = arith.mulf %24, %25 : vector<8x256xf32>
    %c0_11 = arith.constant 0 : index
    %c0_12 = arith.constant 0 : index
    %27 = vector.load %arg4[%c0_11, %c0_12] : memref<8x256xf32, #tpu.memory_space<vmem>>, vector<8x256xf32>
    tpu.vector_store %arg4[%c0_11, %c0_12], %26 {strides = array<i32>} : memref<8x256xf32, #tpu.memory_space<vmem>>, vector<8x256xf32>,
    return
  }
  func.func @transform_0(%arg0: i32) -> (i32, i32) {
    %c0_i32 = arith.constant 0 : i32
    %c0_i32_0 = arith.constant 0 : i32
    %c0_i32_1 = arith.constant 0 : i32
    return %c0_i32, %c0_i32_0 : i32, i32
  }
  func.func @transform_1(%arg0: i32) -> (i32, i32) {
    %c0_i32 = arith.constant 0 : i32
    %c0_i32_0 = arith.constant 0 : i32
    return %c0_i32, %arg0 : i32, i32
  }
  func.func @transform_2(%arg0: i32) -> (i32, i32) {
    %c0_i32 = arith.constant 0 : i32
    %c0_i32_0 = arith.constant 0 : i32
    %c0_i32_1 = arith.constant 0 : i32
    return %c0_i32, %c0_i32_0 : i32, i32
  }
  func.func @transform_3(%arg0: i32) -> (i32, i32) {
    %c0_i32 = arith.constant 0 : i32
    %c0_i32_0 = arith.constant 0 : i32
    return %c0_i32, %arg0 : i32, i32
  }
}

</mosaic_0001>

<bundles_post_ra>
// kernel: tpu_custom_call.1
= control target key start
LH: loop header
LB: loop body
LE: loop exit
PB: predicated region body
PF: predicated region fallthrough
CT: control target
= control target key end

     0   :  { %8 = vsyncpa [#allocation3], 0  ;;  %s852_s0 = inlined_call_operand.vmem [shape: f32[8,64], index: 0, kind: input, shape index: {}]   ;;  %s853_s1 = inlined_call_operand.hbm [shape: f32[64,384], index: 1, kind: input, shape index: {}]   ;;  %s854_s2 = inlined_call_operand.vmem [shape: s32[8,1], index: 2, kind: input, shape index: {}]   ;;  %s855_s3 = inlined_call_operand.hbm [shape: f32[8,384], index: 3, kind: output, shape index: {}]  }
   0x1   :  { %10 = vsyncpa [#allocation3 + $0x1], 0 }
   0x2   :  { %11 = vsyncpa [#allocation4], 0 }
   0x3   :  { %13 = vsyncpa [#allocation4 + $0x1], 0  ;;  %s661_s12 = smov 0   ;;  %s663_s13 = smov 0  }
   0x4   :  { %s665_s14 = smov 0   ;;  %s667_s15 = smov 0  }
   0x5 LB: > { %s682_s16 = sadd.s32 4294967295, %s633_s15   ;;  %s462_s17 = sadd.s32 4294967294, %s633_s15   ;;  %s633_s15 = sphi %s667_s15, %s865_s15   ;;  %s629_s14 = sphi %s665_s14, %s864_s14   ;;  %s625_s13 = sphi %s663_s13, %s863_s13   ;;  %s621_s12 = sphi %s661_s12, %s862_s12  }
   0x6   : > { %s686_s18 = sadd.s32 1, %s633_s15   ;;  %s47_s19 = sadd.s32 1, %s629_s14 }
   0x7   : > { %s44_s20 = ssub.s32 %s633_s15, %s686_s18  ;;  %p54_p0 = scmp.ne.s32.totalorder %s629_s14, %s625_s13 }
   0x8   : > { %p45_p1 = scmp.eq.s32.totalorder %s44_s20, 0  ;;  %p55_p2 = scmp.eq.s32.totalorder %s633_s15, 0 }
   0x9   : > { %p60_p3 = scmp.ne.s32.totalorder %s625_s13, %s621_s12  ;;  %p61_p4 = scmp.eq.s32.totalorder %s682_s16, 0 }
   0xa   : > { %s698_s21 = scalar_select %p45_p1, %s629_s14, %s47_s19  }
   0xb   : > { %p56_p5 = por %p55_p2, %p54_p0  ;;  %p700_p6 = por %p61_p4, %p60_p3 }
   0xc   : > { %p105_p7 = scmp.eq.s32.totalorder %s682_s16, 1  ;;  %p111_p8 = scmp.eq.s32.totalorder %s462_s17, 1 }
   0xd   : > { %p856_p11 = scmp.ge.s32.totalorder %s633_s15, 2 }
   0xe   : > { %p705_p9 = por %p105_p7, %p54_p0  ;;  %p709_p10 = por %p111_p8, %p60_p3 }
   0xf   : > { %133 = sbr.rel (%p856_p11) target bundleno = 52 (0x34), region = 24 }
  0x10   : > { %s859_s24 = scalar_select %p709_p10, 1, 0 }
  0x14   : > { %136 = sbr.rel (!%p56_p5) target bundleno = 52 (0x34), region = 28  ;;  %s137_s25 = sand.u32 (%p56_p5), 1, %s629_s14  }
  0x15   : > { %s466_s26 = sshll.u32 (%p56_p5), %s633_s15, 1  ;;  %s465_s27 = sshll.u32 (%p56_p5), %s137_s25, 7 }
  0x16   : > { %s143_s28 = ssub.s32 (%p56_p5), 3, %s466_s26  ;;  %s724_s4 = scalar_lea.sflag (%p56_p5), [#allocation3], %s137_s25 }
  0x17   : > { %p144_p12 = scmp.lt.s32.totalorder (%p56_p5), %s143_s28, 2  ;;  %s141_s5 = scalar_lea.vmem (%p56_p5), [#allocation2], %s465_s27 }
  0x19   : > { %s867_s28 = smov (!%p144_p12, %s143_s28), 2 }
  0x1a   : > { %s721_s29 = sshll.u32 %s867_s28, 10 }
  0x1b   : > { %s148_s30 = ssub.s32 2048, %s721_s29 }
  0x1c   : > { %149 = vsyncadd %s724_s4, %s148_s30  ;;  %p468_p13 = scmp.ne.s32.totalorder %s721_s29, 0  ;;  %s491_s6 = sshll.u32 %s633_s15, 8 }
  0x1d   : > { %s732_s9 = scalar_lea.hbm %s853_s1, %s491_s6  ;;  %s470_s10 = sshll.u32 %s867_s28, 3 }
  0x1e   : > { %s155_s11 = sshll.u32 %s141_s5, 4  ;;  %s543_s17 = scalar_lea.hbm %s732_s9, %s721_s29  ;;  %s735_s11 = int_to_ptr.vmem [resolvable:$true] %s155_s11 }
  0x1f   : > { %p544_p0 = scmp.ne.s32.totalorder %s732_s9, %s543_s17  ;;  %s547_s25 = scalar_lea.hbm %s853_s1, 3072 }
  0x20   : > { %p548_p3 = scmp.lt.s32.totalorder %s732_s9, %s853_s1  ;;  %p549_p4 = scmp.lt.s32.totalorder %s547_s25, %s543_s17 }
  0x21   : > { %p545_p1 = pnand %p544_p0, %p468_p13 }
  0x22   : > { %p550_p5 = por %p549_p4, %p548_p3 }
  0x23   : > { %p546_p2 = pneg %p545_p1 }
  0x25   : > { %p551_p7 = pnand %p550_p5, %p546_p2 }
  0x27   : > { %554 = shalt.err (!%p551_p7)
}
  0x28   : > { %s555_s30 = scalar_lea.vmem %s735_s11, %s721_s29  ;;  %s635_s5 = smov [#allocation2]  }
  0x29   : > { %p556_p8 = scmp.ne.s32.totalorder %s735_s11, %s555_s30  ;;  %s559_s6 = sshll.u32 %s635_s5, 4  ;;  %s560_s6 = int_to_ptr.vmem [resolvable:$false] %s559_s6 }
  0x2a   : > { %s561_s7 = scalar_lea.vmem %s560_s6, 4096  ;;  %p562_p1 = scmp.lt.s32.totalorder %s735_s11, %s560_s6 }
  0x2b   : > { %p557_p12 = pnand %p556_p8, %p468_p13  ;;  %p563_p11 = scmp.lt.s32.totalorder %s561_s7, %s555_s30 }
  0x2d   : > { %p558_p0 = pneg %p557_p12  ;;  %p564_p10 = por %p563_p11, %p562_p1 }
  0x2f   : > { %p565_p3 = pnand %p564_p10, %p558_p0 }
  0x31   : > { %568 = shalt.err (!%p565_p3)
}
  0x32   : > { %s636_s8 = smov 384   ;;  %s637_s17 = smov 256  }
  0x33   : > { %161 = dma.hbm_to_vmem [thread:$0]  (%p468_p13), %s732_s9, %s721_s29, %s735_s11, %s724_s4, %s636_s8, %s637_s17, %s470_s10  }
  0x34 PF: > { %p473_p2 = scmp.ge.s32.totalorder %s633_s15, 1  ;;  %p163_p4 = scmp.lt.s32.totalorder %s633_s15, 3 }
  0x36   : > { %p164_p11 = pnand %p473_p2, %p163_p4 }
  0x37   : > { %s766_s19 = sand.u32 (!%p164_p11), 1, %s625_s13  }
  0x38   : > { %167 = sbr.rel (%p164_p11) target bundleno = 311 (0x137), region = 32  ;;  %s474_s20 = sshll.u32 (!%p164_p11), %s766_s19, 7 }
  0x39   : > { %s170_s25 = scalar_lea.sflag (!%p164_p11), [#allocation3], %s766_s19  ;;  %s770_s26 = scalar_lea.vmem (!%p164_p11), [#allocation2], %s474_s20 }
  0x3d   : > { %612 = dma.done.wait (%p700_p6), %s170_s25, 2048  }
  0x3e   : > { %614 = vsyncadd (%p700_p6), %s170_s25, 4294965248  ;;  %v638_v0 = vmov 0.0   ;;  %v639_v1 = vmov 0   ;;  %v221_v2 = vld [vmem:[%s770_s26 + $0x78] sm:$0xff]  ;;  %v220_v3 = vld [vmem:[%s770_s26 + $0x70] sm:$0xff]  ;;  %vm269_vm0 = vcmask 523264  }
  0x3f   : > { %337 = vmatprep.mubr.f32.mxu0 %v638_v0  ;;  %538 = vset.pattern.permute.xlu0 %v639_v1  ;;  %v219_v4 = vld [vmem:[%s770_s26 + $0x68] sm:$0xff]  ;;  %v218_v5 = vld [vmem:[%s770_s26 + $0x60] sm:$0xff]  ;;  %v217_v6 = vld [vmem:[%s770_s26 + $0x58] sm:$0xff]  ;;  %v237_v42 = vmul.f32 %v221_v2, %v221_v2  ;;  %v236_v44 = vmul.f32 %v220_v3, %v220_v3  ;;  %v350_v0 = vlaneseq  ;;  %s479_s9 = sshll.u32 %s682_s16, 8  ;;  %s475_s10 = sshll.u32 %s766_s19, 4 }
  0x40   : > { %289 = vmatprep.subr.mxu0 %v221_v2  ;;  %v216_v7 = vld [vmem:[%s770_s26 + $0x50] sm:$0xff]  ;;  %v215_v8 = vld [vmem:[%s770_s26 + $0x48] sm:$0xff]  ;;  %v214_v9 = vld [vmem:[%s770_s26 + $0x40] sm:$0xff]  ;;  %v233_v33 = vmul.f32 %v217_v6, %v217_v6  ;;  %v235_v37 = vmul.f32 %v219_v4, %v219_v4  ;;  %v234_v39 = vmul.f32 %v218_v5, %v218_v5  ;;  %v354_v2 = vstv %s479_s9  ;;  %s195_s11 = scalar_lea.vmem [#allocation5], %s475_s10  ;;  %s372_s27 = scalar_lea.sflag [#allocation4], %s766_s19 }
  0x41   : > { %290 = vmatpush1.msra.mxu0 %v220_v3  ;;  %v211_v10 = vld [vmem:[%s770_s26 + $0x28] sm:$0xff]  ;;  %v209_v11 = vld [vmem:[%s770_s26 + $0x18] sm:$0xff]  ;;  %v208_v12 = vld [vmem:[%s770_s26 + $0x10] sm:$0xff]  ;;  %v231_v29 = vmul.f32 %v215_v8, %v215_v8  ;;  %v230_v31 = vmul.f32 %v214_v9, %v214_v9  ;;  %v232_v35 = vmul.f32 %v216_v7, %v216_v7  ;;  %v351_v1 = vand.u32 127, %v350_v0  ;;  %s483_s30 = sshll.u32 (%p705_p9), %s682_s16, 1 }
  0x42   : > { %291 = vmatprep.subr.mxu0 %v219_v4  ;;  %v207_v13 = vld [vmem:[%s770_s26 + $0x8] sm:$0xff]  ;;  %v227_v14 = vmul.f32 %v211_v10, %v211_v10  ;;  %v210_v15 = vld [vmem:[%s770_s26 + $0x20] sm:$0xff]  ;;  %v225_v16 = vmul.f32 %v209_v11, %v209_v11  ;;  %v224_v17 = vmul.f32 %v208_v12, %v208_v12  ;;  %v213_v21 = vld [vmem:[%s770_s26 + $0x38] sm:$0xff]  ;;  %s380_s5 = ssub.s32 (%p705_p9), 3, %s483_s30 }
  0x43   : > { %292 = vmatpush1.msra.mxu0 %v218_v5  ;;  %v223_v18 = vmul.f32 %v207_v13, %v207_v13  ;;  %v206_v19 = vld [vmem:[%s770_s26] sm:$0xff]  ;;  %v226_v22 = vmul.f32 %v210_v15, %v210_v15  ;;  %v229_v24 = vmul.f32 %v213_v21, %v213_v21  ;;  %v212_v25 = vld [vmem:[%s770_s26 + $0x30] sm:$0xff]  ;;  %v352_v4 = vadd.s32 128, %v351_v1  ;;  %p381_p6 = scmp.lt.s32.totalorder (%p705_p9), %s380_s5, 2 }
  0x44   : > { %293 = vmatprep.subr.mxu0 %v217_v6  ;;  %v357_v20 = vld [vmem:[%s854_s2] sm:$0xff]  ;;  %v222_v23 = vmul.f32 %v206_v19, %v206_v19  ;;  %v228_v27 = vmul.f32 %v212_v25, %v212_v25 }
  0x45   : > { %294 = vmatpush1.msra.mxu0 %v216_v7  ;;  %359 = vperm.xlu0 %538, %v357_v20   ;;  %v251_v26 = vadd.f32 %v225_v16, %v223_v18  ;;  %v268_v41 = vld [vmem:[%s852_s0] sm:$0xff]  ;;  %v355_v7 = vadd.s32 %v354_v2, %v351_v1 }
  0x46   : > { %295 = vmatprep.subr.mxu0 %v215_v8  ;;  %v238_v28 = vadd.f32 %v224_v17, %v222_v23 }
  0x47   : > { %296 = vmatpush1.msra.mxu0 %v214_v9  ;;  %v252_v30 = vadd.f32 %v251_v26, %v227_v14 }
  0x48   : > { %297 = vmatprep.subr.mxu0 %v213_v21  ;;  %v239_v32 = vadd.f32 %v238_v28, %v226_v22 }
  0x49   : > { %298 = vmatpush1.msra.mxu0 %v212_v25  ;;  %v253_v34 = vadd.f32 %v252_v30, %v229_v24 }
  0x4a   : > { %299 = vmatprep.subr.mxu0 %v211_v10  ;;  %v240_v36 = vadd.f32 %v239_v32, %v228_v27 }
  0x4b   : > { %300 = vmatpush1.msra.mxu0 %v210_v15  ;;  %v254_v38 = vadd.f32 %v253_v34, %v231_v29 }
  0x4c   : > { %301 = vmatprep.subr.mxu0 %v209_v11  ;;  %v241_v40 = vadd.f32 %v240_v36, %v230_v31  ;;  %v356_v11 = vadd.s32 %v354_v2, %v352_v4 }
  0x4d   : > { %302 = vmatpush1.msra.mxu0 %v208_v12  ;;  %v255_v43 = vadd.f32 %v254_v38, %v233_v33 }
  0x4e   : > { %303 = vmatprep.subr.mxu0 %v207_v13  ;;  %v242_v45 = vadd.f32 %v241_v40, %v232_v35 }
  0x4f   : > { %304 = vmatpush1.msra.mxu0 %v206_v19  ;;  %v256_v46 = vadd.f32 %v255_v43, %v235_v37 }
  0x50   : > { %476 = vmatmul.mubr.msk.f32.vlgmr.msra.gmra.mxu0 %vm269_vm0, %v268_v41  ;;  %v243_v47 = vadd.f32 %v242_v45, %v234_v39 }
  0x51   : > { %v257_v48 = vadd.f32 %v256_v46, %v237_v42 }
  0x52   : > { %v244_v49 = vadd.f32 %v243_v47, %v236_v44 }
  0x53   : > { %v258_v51 = vrot.slane %v257_v48, 4 }
  0x54   : > { %v245_v50 = vrot.slane %v244_v49, 4 }
  0x55   : > { %v259_v53 = vadd.f32 %v258_v51, %v257_v48 }
  0x56   : > { %v246_v52 = vadd.f32 %v245_v50, %v244_v49 }
  0x57   : > { %v260_v55 = vrot.slane %v259_v53, 2 }
  0x58   : > { %v247_v54 = vrot.slane %v246_v52, 2 }
  0x59   : > { %v261_v57 = vadd.f32 %v260_v55, %v259_v53 }
  0x5a   : > { %v248_v56 = vadd.f32 %v247_v54, %v246_v52 }
  0x5b   : > { %v262_v59 = vrot.slane %v261_v57, 1 }
  0x5c   : > { %v249_v58 = vrot.slane %v248_v56, 1 }
  0x5d   : > { %v263_v61 = vadd.f32 %v262_v59, %v261_v57 }
  0x5e   : > { %v250_v60 = vadd.f32 %v249_v58, %v248_v56 }
  0x5f   : > { %v265_v63 = vmax.f32 %v263_v61, 1e-12 }
  0x60   : > { %v264_v62 = vmax.f32 %v250_v60, 1e-12 }
  0x62   : > { %539 = vrsqrt.f32 %v264_v62 }
  0x63   : > { %541 = vrsqrt.f32 %v265_v63 }
  0x6f   : > { %v540_v3 = vpop.eup %539 }
  0x70   : > { %v542_v5 = vpop.eup %541 }
  0xc0   : > { %v360_v9 = vpop.permute.xlu0 %359 }
  0xc1   : > { %vm361_vm1 = vcmp.eq.s32.totalorder %v355_v7, %v360_v9  ;;  %vm362_vm2 = vcmp.eq.s32.totalorder %v356_v11, %v360_v9 }
 0x110   : > { %v339_v6 = vpop.f32.mrf.mxu0 }
 0x111   : > { %v344_v8 = vmul.f32 %v540_v3, %v339_v6 }
 0x112   : > { %v341_v10 = vpop.f32.mrf.mxu0 }
 0x113   : > { %v477_v12 = vclamps-f32 %v344_v8, 0.9999  ;;  %v345_v13 = vmul.f32 %v542_v5, %v341_v10 }
 0x115   : > { %v480_v14 = vadd.f32 -0.4, %v477_v12  ;;  %v478_v15 = vclamps-f32 %v345_v13, 0.9999 }
 0x117   : > { %v481_v16 = vadd.f32 -0.4, %v478_v15  ;;  %v365_v17 = vsel %vm361_vm1, %v480_v14, %v477_v12 }
 0x118   : > { %v367_v18 = vmul.f32 64.0, %v365_v17  ;;  %378 = sbr.rel (!%p705_p9) target bundleno = 311 (0x137), region = 40 }
 0x119   : > { %v366_v19 = vsel %vm362_vm2, %v481_v16, %v478_v15 }
 0x11a   : > { %v368_v20 = vmul.f32 64.0, %v366_v19  ;;  %369 = vst [vmem:[%s195_s11] sm:$0xff] %v367_v18 }
 0x11c   : > { %370 = vst [vmem:[%s195_s11 + $0x8] sm:$0xff] %v368_v20 }
 0x11d   : > { %s869_s5 = smov (!%p381_p6, %s380_s5), 2 }
 0x11e   : > { %s806_s6 = sshll.u32 %s869_s5, 7 }
 0x11f   : > { %s385_s7 = ssub.s32 256, %s806_s6 }
 0x120   : > { %386 = vsyncadd %s372_s27, %s385_s7  ;;  %p485_p10 = scmp.ne.s32.totalorder %s806_s6, 0  ;;  %s389_s17 = scalar_lea.hbm %s855_s3, %s479_s9 }
 0x121   : > { %s392_s20 = sshll.u32 %s195_s11, 4  ;;  %s640_s26 = smov [#allocation5]   ;;  %s393_s20 = int_to_ptr.vmem [resolvable:$true] %s392_s20 }
 0x122   : > { %s569_s25 = scalar_lea.vmem %s393_s20, %s806_s6  ;;  %s573_s22 = sshll.u32 %s640_s26, 4  ;;  %s574_s22 = int_to_ptr.vmem [resolvable:$false] %s573_s22 }
 0x123   : > { %p570_p9 = scmp.ne.s32.totalorder %s393_s20, %s569_s25  ;;  %s575_s28 = scalar_lea.vmem %s574_s22, 512 }
 0x124   : > { %p576_p7 = scmp.lt.s32.totalorder %s393_s20, %s574_s22  ;;  %p577_p8 = scmp.lt.s32.totalorder %s575_s28, %s569_s25 }
 0x125   : > { %p571_p13 = pnand %p570_p9, %p485_p10 }
 0x126   : > { %p578_p12 = por %p577_p8, %p576_p7 }
 0x127   : > { %p572_p5 = pneg %p571_p13 }
 0x129   : > { %p579_p0 = pnand %p578_p12, %p572_p5 }
 0x12b   : > { %582 = shalt.err (!%p579_p0)
}
 0x12c   : > { %s583_s16 = scalar_lea.hbm %s389_s17, %s806_s6  ;;  %s587_s9 = scalar_lea.hbm %s855_s3, 384 }
 0x12d   : > { %p584_p1 = scmp.ne.s32.totalorder %s389_s17, %s583_s16  ;;  %p588_p4 = scmp.lt.s32.totalorder %s389_s17, %s855_s3 }
 0x12e   : > { %p589_p11 = scmp.lt.s32.totalorder %s587_s9, %s583_s16 }
 0x12f   : > { %p585_p3 = pnand %p584_p1, %p485_p10 }
 0x130   : > { %p590_p6 = por %p589_p11, %p588_p4 }
 0x131   : > { %p586_p2 = pneg %p585_p3 }
 0x133   : > { %p591_p9 = pnand %p590_p6, %p586_p2 }
 0x135   : > { %594 = shalt.err (!%p591_p9)
}
 0x136   : > { %395 = dma.vmem_to_hbm [thread:$0]  (%p485_p10), %s393_s20, %s806_s6, %s389_s17, %s372_s27  }
 0x137 PF: > { %s404_s30 = sand.u32 1, %s621_s12   ;;  %p860_p13 = scmp.ne.s32.totalorder %s859_s24, 0 }
 0x138   : > { %p861_p5 = scmp.ge.s32.totalorder %s633_s15, 2  ;;  %s405_s5 = scalar_lea.sflag [#allocation4], %s404_s30 }
 0x13a   : > { %p498_p7 = pnand %p861_p5, %p860_p13 }
 0x13c   : > { %p499_p8 = pneg %p498_p7 }
 0x13e   : > { %616 = dma.done.wait (%p499_p8), %s405_s5, 256  }
 0x13f   : > { %618 = vsyncadd (%p499_p8), %s405_s5, 4294967040  ;;  %p16_p12 = scmp.ge.s32.totalorder %s686_s18, 4   ;;  %s862_s12 = smov %s625_s13 }
 0x140   : > { %s863_s13 = smov %s629_s14  ;;  %s864_s14 = smov %s698_s21 }
 0x141   : > { %s865_s15 = smov %s686_s18  ;;  %18 = sbr.rel (!%p16_p12) target bundleno = 5 (0x5), region = 77 }
 0x146   :  { %410 = vsyncpa [#allocation3], 1 }
 0x147   :  { %412 = vsyncpa [#allocation3 + $0x1], 1 }
 0x148   :  { %413 = vsyncpa [#allocation4], 1 }
 0x149   :  { %415 = vsyncpa [#allocation4 + $0x1], 1 }

</bundles_post_ra>
